<compile_context>
chip_gen: v7x
topology: tpu7x:2x2x1
jax: 0.10.0
libtpu: 0.0.40
codegen_flags: <defaults>
</compile_context>

<pallas_src>
import jax
import jax.numpy as jnp
from jax.experimental import pallas as pl
from jax.experimental.pallas import tpu as pltpu

LANE = 128


def _round_up(n, m):
    return ((n + m - 1) // m) * m


def ffnn_kernel(x_ref, w1_ref, b1_ref, w2_ref, b2_ref, out_ref):
    # First linear layer + ReLU. bf16 operands on the MXU, f32 accumulation.
    x = x_ref[...]                                                   # (blk, D) bf16
    h = jnp.dot(x, w1_ref[...], preferred_element_type=jnp.float32)  # (blk, H) f32
    h = jnp.maximum(h + b1_ref[...], 0.0)

    # Second linear layer -> logits over the (padded, lane-dense) class axis.
    logits = jnp.dot(h.astype(jnp.bfloat16), w2_ref[...],
                     preferred_element_type=jnp.float32) + b2_ref[...]  # (blk, 128) f32

    # Numerically stable log-softmax in f32 (padded columns sit at -1e30 and
    # contribute exp(...) == 0; they are sliced off outside the kernel).
    m = jnp.max(logits, axis=-1, keepdims=True)
    shifted = logits - m
    lse = jnp.log(jnp.sum(jnp.exp(shifted), axis=-1, keepdims=True))
    out_ref[...] = (shifted - lse).astype(out_ref.dtype)


def ffnn_forward(x, w1, b1, w2, b2, *, block_b=512):
    """x: (B, D) f32;  w1: (D, H);  b1: (1, H);  w2: (H, OUT);  b2: (1, OUT).

    Weights are stored pre-transposed as (in_features, out_features) so the
    kernel computes x @ W (PyTorch nn.Linear stores (out, in)).
    Returns (B, OUT) f32 log-probabilities.
    """
    B, D = x.shape
    H = w1.shape[1]
    OUT = w2.shape[1]
    OUT_P = _round_up(max(OUT, LANE), LANE)        # lane-dense class axis

    # Pad the class axis: zero weight columns, -1e30 bias columns (finite, so
    # no inf-inf NaN in the shifted logits of the padded columns).
    w2_p = jnp.pad(w2, ((0, 0), (0, OUT_P - OUT)))
    b2_p = jnp.pad(b2, ((0, 0), (0, OUT_P - OUT)), constant_values=-1e30)

    # bf16 inputs / weight matrices (halve HBM bytes); keep biases f32.
    x_bf = x.astype(jnp.bfloat16)
    w1_bf = w1.astype(jnp.bfloat16)
    w2_bf = w2_p.astype(jnp.bfloat16)
    b1_f32 = b1.astype(jnp.float32)
    b2_f32 = b2_p.astype(jnp.float32)

    # Batch tile: as large as requested, clamped to the (8-aligned) batch.
    blk = max(8, min((block_b // 8) * 8, _round_up(B, 8)))
    B_p = _round_up(B, blk)
    if B_p != B:
        x_bf = jnp.pad(x_bf, ((0, B_p - B), (0, 0)))
    grid = (B_p // blk,)

    # VMEM budget: double-buffered x & out tiles + resident params, with margin.
    # Kept well under v7x's 64 MiB physical VMEM.
    vmem_bytes = (
        2 * blk * D * 2            # x tiles (bf16, double-buffered)
        + 2 * blk * OUT_P * 4      # out tiles (f32, double-buffered)
        + 2 * (D * H * 2 + H * 4 + H * OUT_P * 2 + OUT_P * 4)  # params
    )
    vmem_limit = min(max(4 * vmem_bytes, 16 << 20), 48 << 20)

    out = pl.pallas_call(
        ffnn_kernel,
        out_shape=jax.ShapeDtypeStruct((B_p, OUT_P), jnp.float32),
        grid=grid,
        in_specs=[
            pl.BlockSpec((blk, D), lambda i: (i, 0)),       # x tile
            pl.BlockSpec((D, H), lambda i: (0, 0)),          # W1 (resident)
            pl.BlockSpec((1, H), lambda i: (0, 0)),          # b1
            pl.BlockSpec((H, OUT_P), lambda i: (0, 0)),      # W2 padded (resident)
            pl.BlockSpec((1, OUT_P), lambda i: (0, 0)),      # b2 padded
        ],
        out_specs=pl.BlockSpec((blk, OUT_P), lambda i: (i, 0)),
        compiler_params=pltpu.CompilerParams(
            dimension_semantics=("parallel",),
            vmem_limit_bytes=vmem_limit,
        ),
    )(x_bf, w1_bf, b1_f32, w2_bf, b2_f32)

    # Drop batch padding and the padded class columns.
    return out[:B, :OUT]


def ffnn_reference(x, w1, b1, w2, b2):
    h = jnp.maximum(x @ w1 + b1, 0.0)
    logits = h @ w2 + b2
    return jax.nn.log_softmax(logits, axis=-1)


if __name__ == "__main__":
    # Small shapes consistent with the module: input_dim=32, h=32, output_dim=5.
    B, D, H, OUT = 8, 32, 32, 5

    key = jax.random.PRNGKey(0)
    kx, kw1, kb1, kw2, kb2 = jax.random.split(key, 5)

    # Deterministic init mirroring nn.Linear's default uniform(-1/sqrt(fan_in), ...).
    bound1 = 1.0 / (D ** 0.5)
    bound2 = 1.0 / (H ** 0.5)
    x = jax.random.normal(kx, (B, D), dtype=jnp.float32)
    w1 = jax.random.uniform(kw1, (D, H), jnp.float32, -bound1, bound1)
    b1 = jax.random.uniform(kb1, (1, H), jnp.float32, -bound1, bound1)
    w2 = jax.random.uniform(kw2, (H, OUT), jnp.float32, -bound2, bound2)
    b2 = jax.random.uniform(kb2, (1, OUT), jnp.float32, -bound2, bound2)

    out = ffnn_forward(x, w1, b1, w2, b2)
    out = jax.block_until_ready(out)

    ref = ffnn_reference(x, w1, b1, w2, b2)
    assert out.shape == (B, OUT)
    # bf16 inputs/weights -> relax tolerance vs the f32 reference.
    assert jnp.allclose(out, ref, atol=3e-2, rtol=3e-2), "mismatch vs reference"
    # log-softmax rows should exp-sum to 1 (computed in f32, so this is tight).
    assert jnp.allclose(jnp.sum(jnp.exp(out), axis=-1), 1.0, atol=1e-4)

    print("KERNEL_OK")
</pallas_src>

<mosaic_0001>
module attributes {stable_mosaic.version = 11 : i64} {
  func.func @ffnn_kernel(%arg0: i32, %arg1: memref<8x32xbf16, #tpu.memory_space<vmem>>, %arg2: memref<32x32xbf16, #tpu.memory_space<vmem>>, %arg3: memref<1x32xf32, #tpu.memory_space<vmem>>, %arg4: memref<32x128xbf16, #tpu.memory_space<vmem>>, %arg5: memref<1x128xf32, #tpu.memory_space<vmem>>, %arg6: memref<8x128xf32, #tpu.memory_space<vmem>>) attributes {dimension_semantics = [#tpu.dimension_semantics<parallel>], iteration_bounds = array<i64: 1>, scalar_prefetch = 0 : i64, scratch_operands = 0 : i64, tpu.core_type = #tpu.core_type<tc>, window_params = [{transform_indices = @transform_0, window_bounds = array<i64: 8, 32>}, {pipeline_mode = #tpu.pipeline_mode<synchronous>, transform_indices = @transform_1, window_bounds = array<i64: 32, 32>}, {pipeline_mode = #tpu.pipeline_mode<synchronous>, transform_indices = @transform_2, window_bounds = array<i64: 1, 32>}, {pipeline_mode = #tpu.pipeline_mode<synchronous>, transform_indices = @transform_3, window_bounds = array<i64: 32, 128>}, {pipeline_mode = #tpu.pipeline_mode<synchronous>, transform_indices = @transform_4, window_bounds = array<i64: 1, 128>}, {transform_indices = @transform_5, window_bounds = array<i64: 8, 128>}]} {
    %c0 = arith.constant 0 : index
    %c0_0 = arith.constant 0 : index
    %0 = vector.load %arg1[%c0, %c0_0] : memref<8x32xbf16, #tpu.memory_space<vmem>>, vector<8x32xbf16>
    %c0_1 = arith.constant 0 : index
    %c0_2 = arith.constant 0 : index
    %1 = vector.load %arg2[%c0_1, %c0_2] : memref<32x32xbf16, #tpu.memory_space<vmem>>, vector<32x32xbf16>
    %cst = arith.constant dense<0.000000e+00> : vector<8x32xf32>
    %2 = tpu.matmul %0, %1, %cst {dimension_numbers = #tpu.dot_dimension_numbers<[1], [0], [0], [1], [0, 0, 1, 1], [], []>} : vector<8x32xbf16>, vector<32x32xbf16>, vector<8x32xf32> -> vector<8x32xf32>
    %c0_3 = arith.constant 0 : index
    %c0_4 = arith.constant 0 : index
    %3 = vector.load %arg3[%c0_3, %c0_4] : memref<1x32xf32, #tpu.memory_space<vmem>>, vector<1x32xf32>
    %4 = vector.broadcast %3 : vector<1x32xf32> to vector<8x32xf32>
    %5 = arith.addf %2, %4 : vector<8x32xf32>
    %cst_5 = arith.constant 0.000000e+00 : f32
    %6 = vector.broadcast %cst_5 : f32 to vector<8x32xf32>
    %7 = arith.maximumf %5, %6 : vector<8x32xf32>
    %8 = arith.truncf %7 : vector<8x32xf32> to vector<8x32xbf16>
    %c0_6 = arith.constant 0 : index
    %c0_7 = arith.constant 0 : index
    %9 = vector.load %arg4[%c0_6, %c0_7] : memref<32x128xbf16, #tpu.memory_space<vmem>>, vector<32x128xbf16>
    %cst_8 = arith.constant dense<0.000000e+00> : vector<8x128xf32>
    %10 = tpu.matmul %8, %9, %cst_8 {dimension_numbers = #tpu.dot_dimension_numbers<[1], [0], [0], [1], [0, 0, 1, 1], [], []>} : vector<8x32xbf16>, vector<32x128xbf16>, vector<8x128xf32> -> vector<8x128xf32>
    %c0_9 = arith.constant 0 : index
    %c0_10 = arith.constant 0 : index
    %11 = vector.load %arg5[%c0_9, %c0_10] : memref<1x128xf32, #tpu.memory_space<vmem>>, vector<1x128xf32>
    %12 = vector.broadcast %11 : vector<1x128xf32> to vector<8x128xf32>
    %13 = arith.addf %10, %12 : vector<8x128xf32>
    %cst_11 = arith.constant dense<0xFF800000> : vector<8xf32>
    %14 = vector.multi_reduction <maximumf>, %13, %cst_11 [1] : vector<8x128xf32> to vector<8xf32>
    %15 = vector.shape_cast %14 : vector<8xf32> to vector<8x1xf32>
    %16 = vector.broadcast %15 : vector<8x1xf32> to vector<8x128xf32>
    %17 = arith.subf %13, %16 : vector<8x128xf32>
    %18 = math.exp %17 : vector<8x128xf32>
    %cst_12 = arith.constant dense<0.000000e+00> : vector<8xf32>
    %19 = vector.multi_reduction <add>, %18, %cst_12 [1] : vector<8x128xf32> to vector<8xf32>
    %20 = vector.shape_cast %19 : vector<8xf32> to vector<8x1xf32>
    %21 = math.log %20 : vector<8x1xf32>
    %22 = vector.broadcast %21 : vector<8x1xf32> to vector<8x128xf32>
    %23 = arith.subf %17, %22 : vector<8x128xf32>
    %c0_13 = arith.constant 0 : index
    %c0_14 = arith.constant 0 : index
    %24 = vector.load %arg6[%c0_13, %c0_14] : memref<8x128xf32, #tpu.memory_space<vmem>>, vector<8x128xf32>
    tpu.vector_store %arg6[%c0_13, %c0_14], %23 {strides = array<i32>} : memref<8x128xf32, #tpu.memory_space<vmem>>, vector<8x128xf32>,
    return
  }
  func.func @transform_0(%arg0: i32) -> (i32, i32) {
    %c0_i32 = arith.constant 0 : i32
    %c0_i32_0 = arith.constant 0 : i32
    return %arg0, %c0_i32 : i32, i32
  }
  func.func @transform_1(%arg0: i32) -> (i32, i32) {
    %c0_i32 = arith.constant 0 : i32
    %c0_i32_0 = arith.constant 0 : i32
    %c0_i32_1 = arith.constant 0 : i32
    return %c0_i32, %c0_i32_0 : i32, i32
  }
  func.func @transform_2(%arg0: i32) -> (i32, i32) {
    %c0_i32 = arith.constant 0 : i32
    %c0_i32_0 = arith.constant 0 : i32
    %c0_i32_1 = arith.constant 0 : i32
    return %c0_i32, %c0_i32_0 : i32, i32
  }
  func.func @transform_3(%arg0: i32) -> (i32, i32) {
    %c0_i32 = arith.constant 0 : i32
    %c0_i32_0 = arith.constant 0 : i32
    %c0_i32_1 = arith.constant 0 : i32
    return %c0_i32, %c0_i32_0 : i32, i32
  }
  func.func @transform_4(%arg0: i32) -> (i32, i32) {
    %c0_i32 = arith.constant 0 : i32
    %c0_i32_0 = arith.constant 0 : i32
    %c0_i32_1 = arith.constant 0 : i32
    return %c0_i32, %c0_i32_0 : i32, i32
  }
  func.func @transform_5(%arg0: i32) -> (i32, i32) {
    %c0_i32 = arith.constant 0 : i32
    %c0_i32_0 = arith.constant 0 : i32
    return %arg0, %c0_i32 : i32, i32
  }
}

</mosaic_0001>

<bundles_post_ra>
// kernel: tpu_custom_call.1
= control target key start
LH: loop header
LB: loop body
LE: loop exit
PB: predicated region body
PF: predicated region fallthrough
CT: control target
= control target key end

     0   :  { %10 = vsyncpa [#allocation3], 0  ;;  %s462_s0 = inlined_call_operand.hbm [shape: bf16[8,32], index: 0, kind: input, shape index: {}]   ;;  %s463_s1 = inlined_call_operand.hbm [shape: bf16[32,32], index: 1, kind: input, shape index: {}]   ;;  %s464_s2 = inlined_call_operand.vmem [shape: f32[1,32], index: 2, kind: input, shape index: {}]   ;;  %s465_s3 = inlined_call_operand.hbm [shape: bf16[32,128], index: 3, kind: input, shape index: {}]   ;;  %s466_s4 = inlined_call_operand.vmem [shape: f32[1,128], index: 4, kind: input, shape index: {}]   ;;  %s467_s5 = inlined_call_operand.hbm [shape: f32[8,128], index: 5, kind: output, shape index: {}]  }
   0x1   :  { %11 = vsyncpa [#allocation6], 0 }
   0x2   :  { %12 = vsyncpa [#allocation4], 0  ;;  %s364_s18 = smov [#allocation5]   ;;  %s270_s22 = scalar_lea.hbm %s463_s1, 256 }
   0x3   :  { %s28_s19 = sshll.u32 %s364_s18, 4  ;;  %p271_p0 = scmp.ne.s32.totalorder %s463_s1, %s270_s22  ;;  %s29_s19 = int_to_ptr.vmem [resolvable:$true] %s28_s19 }
   0x4   :  { %p274_p1 = scmp.lt.u32.totalorder %s270_s22, %s463_s1 }
   0x6   :  { %p276_p2 = pnand %p274_p1, %p271_p0 }
   0x8   :  { %279 = shalt.err (!%p276_p2)
}
   0x9   :  { %s280_s27 = scalar_lea.vmem %s29_s19, 256  ;;  %p285_p4 = scmp.lt.s32.totalorder %s29_s19, %s29_s19 }
   0xa   :  { %p281_p3 = scmp.ne.s32.totalorder %s29_s19, %s280_s27  ;;  %p286_p5 = scmp.lt.s32.totalorder %s280_s27, %s280_s27 }
   0xc   :  { %p287_p6 = por %p286_p5, %p285_p4 }
   0xe   :  { %p288_p7 = pnand %p287_p6, %p281_p3 }
  0x10   :  { %291 = shalt.err (!%p288_p7)
}
  0x11   :  { %s365_s28 = smov 64   ;;  %s366_s29 = smov 4  }
  0x12   :  { %34 = dma.hbm_to_vmem [thread:$0]  %s463_s1, 256, %s29_s19, [#allocation6], %s365_s28, %s365_s28, %s366_s29  }
  0x13   :  { %s367_s7 = smov [#allocation2]   ;;  %s368_s9 = smov [#allocation7]  }
  0x14   :  { %s19_s8 = sshll.u32 %s367_s7, 4  ;;  %s42_s10 = sshll.u32 %s368_s9, 4  ;;  %s20_s8 = int_to_ptr.vmem [resolvable:$true] %s19_s8  ;;  %s43_s10 = int_to_ptr.vmem [resolvable:$true] %s42_s10 }
  0x15   :  { %s292_s13 = scalar_lea.hbm %s462_s0, 64 }
  0x16   :  { %p293_p8 = scmp.ne.s32.totalorder %s462_s0, %s292_s13  ;;  %p296_p9 = scmp.lt.u32.totalorder %s292_s13, %s462_s0 }
  0x18   :  { %p298_p10 = pnand %p296_p9, %p293_p8 }
  0x1a   :  { %301 = shalt.err (!%p298_p10)
}
  0x1b   :  { %s302_s1 = scalar_lea.vmem %s20_s8, 64  ;;  %p307_p12 = scmp.lt.s32.totalorder %s20_s8, %s20_s8 }
  0x1c   :  { %p303_p11 = scmp.ne.s32.totalorder %s20_s8, %s302_s1  ;;  %p308_p13 = scmp.lt.s32.totalorder %s302_s1, %s302_s1 }
  0x1e   :  { %p309_p0 = por %p308_p13, %p307_p12 }
  0x20   :  { %p310_p1 = pnand %p309_p0, %p303_p11 }
  0x22   :  { %313 = shalt.err (!%p310_p1)
}
  0x23   :  { %22 = dma.hbm_to_vmem [thread:$0]  %s462_s0, 64, %s20_s8, [#allocation3]  }
  0x24   :  { %s314_s22 = scalar_lea.hbm %s465_s3, 256 }
  0x25   :  { %p315_p2 = scmp.ne.s32.totalorder %s465_s3, %s314_s22  ;;  %p318_p3 = scmp.lt.u32.totalorder %s314_s22, %s465_s3 }
  0x27   :  { %p320_p4 = pnand %p318_p3, %p315_p2 }
  0x29   :  { %323 = shalt.err (!%p320_p4)
}
  0x2a   :  { %s324_s27 = scalar_lea.vmem %s43_s10, 256  ;;  %p329_p6 = scmp.lt.s32.totalorder %s43_s10, %s43_s10 }
  0x2b   :  { %p325_p5 = scmp.ne.s32.totalorder %s43_s10, %s324_s27  ;;  %p330_p7 = scmp.lt.s32.totalorder %s324_s27, %s324_s27 }
  0x2d   :  { %p331_p8 = por %p330_p7, %p329_p6 }
  0x2f   :  { %p332_p9 = pnand %p331_p8, %p325_p5 }
  0x31   :  { %335 = shalt.err (!%p332_p9)
}
  0x32   :  { %48 = dma.hbm_to_vmem [thread:$0]  %s465_s3, 256, %s43_s10, [#allocation6], %s365_s28, %s365_s28, %s366_s29  }
  0x33   :  { %358 = dma.done.wait [#allocation3], 64  }
  0x34   :  { %359 = vsyncadd [#allocation3], 4294967232 }
  0x35   :  { %360 = dma.done.wait [#allocation6], 512  }
  0x36   :  { %361 = vsyncadd [#allocation6], 4294966784  ;;  %v369_v0 = vmov 0.0   ;;  %vm370_vm0 = vmmov 0   ;;  %v262_v1 = vld [vmem:[#allocation5] sm:$0xff]   ;;  %v263_v2 = vld [vmem:[#allocation5 + $0x8] sm:$0xff]  }
  0x37   :  { %238 = vmatprep.subr.bf16.mxu0 %v369_v0  ;;  %242 = vmatprep.mubr.msk.bf16.mxu0 %vm370_vm0, %v369_v0  ;;  %v61_v3 = vld [vmem:[#allocation2] sm:$0xf]  ;;  %vm85_vm1 = vcmask 261120   ;;  %v264_v4 = vld [vmem:[#allocation7] sm:$0xff]  }
  0x38   :  { %246 = vmatprep.subr.bf16.mxu1 %v369_v0  ;;  %250 = vmatprep.mubr.msk.bf16.mxu1 %vm370_vm0, %v369_v0  ;;  %v265_v5 = vld [vmem:[#allocation7 + $0x8] sm:$0xff]  }
  0x39   :  { %239 = vmatpush3.bf16.msra.mxu0 %v262_v1  ;;  %247 = vmatpush3.bf16.msra.mxu1 %v264_v4  ;;  %v224_v6 = vld [vmem:[%s464_s2] ss:$0 sm:$0xff]  ;;  %s371_s2 = smov [#allocation8]  }
  0x3a   :  { %240 = vmatprep.subr.bf16.mxu0 %v369_v0  ;;  %248 = vmatprep.subr.bf16.mxu1 %v369_v0  ;;  %v228_v14 = vld [vmem:[%s466_s4] ss:$0 sm:$0xff]  ;;  %s214_s7 = sshll.u32 %s371_s2, 4  ;;  %s215_s7 = int_to_ptr.vmem [resolvable:$true] %s214_s7 }
  0x3b   :  { %s336_s4 = scalar_lea.vmem %s215_s7, 128  ;;  %p341_p11 = scmp.lt.s32.totalorder %s215_s7, %s215_s7 }
  0x3c   :  { %p337_p10 = scmp.ne.s32.totalorder %s215_s7, %s336_s4  ;;  %p342_p12 = scmp.lt.s32.totalorder %s336_s4, %s336_s4 }
  0x3d   :  { %241 = vmatpush3.bf16.msra.mxu0 %v263_v2  ;;  %249 = vmatpush3.bf16.msra.mxu1 %v265_v5 }
  0x3e   :  { %p343_p13 = por %p342_p12, %p341_p11 }
  0x40   :  { %243 = vmatmul.mubr.msk.bf16.vlgmr.msra.gmra.mrb[0].mxu0 %vm85_vm1, %v61_v3  ;;  %p344_p0 = pnand %p343_p13, %p337_p10 }
 0x113   :  { %v123_v7 = vpop.f32.mrb[0].mxu0 }
 0x114   :  { %v124_v8 = vadd.f32 %v224_v6, %v123_v7  ;;  %v244_v9 = vpop.f32.mrb[1].mxu0 }
 0x115   :  { %v126_v10 = vpop.f32.mrb[2].mxu0 }
 0x116   :  { %v129_v11 = vmax.f32 %v124_v8, 0.0  ;;  %v245_v12 = vpop.f32.mrb[3].mxu0 }
 0x118   :  { %v130_v13 = vpack.c.bf16 %v129_v11, %v129_v11 }
 0x11a   :  { %251 = vmatmul.mubr.msk.bf16.vlgmr.msra.gmra.mrb[0].mxu1 %vm85_vm1, %v130_v13 }
 0x1ed   :  { %v191_v15 = vpop.f32.mrb[0].mxu1 }
 0x1ee   :  { %v192_v16 = vadd.f32 %v228_v14, %v191_v15  ;;  %v252_v17 = vpop.f32.mrb[1].mxu1 }
 0x1ef   :  { %v194_v18 = vpop.f32.mrb[2].mxu1 }
 0x1f0   :  { %197 = vmax.xlane.f32.xlu0 %v192_v16  ;;  %v253_v19 = vpop.f32.mrb[3].mxu1 }
 0x27d   :  { %v198_v20 = vpop.xlane.xlu0 %197 }
 0x27e   :  { %v199_v21 = vsub.f32 %v192_v16, %v198_v20 }
 0x280   :  { %v200_v22 = vmul.f32 1.442695, %v199_v21 }
 0x282   :  { %266 = vpow2.f32 %v200_v22 }
 0x28c   :  { %v267_v23 = vpop.eup %266 }
 0x28d   :  { %202 = vadd.xlane.f32.xlu0 %v267_v23 }
 0x31a   :  { %v203_v24 = vpop.xlane.xlu0 %202 }
 0x31b   :  { %268 = vlog2.f32 %v203_v24 }
 0x325   :  { %v269_v25 = vpop.eup %268 }
 0x326   :  { %v205_v26 = vmul.f32 0.6931472, %v269_v25 }
 0x328   :  { %v206_v27 = vsub.f32 %v199_v21, %v205_v26 }
 0x32a   :  { %207 = vst [vmem:[#allocation8] sm:$0xff] %v206_v27 }
 0x32b   :  { %347 = shalt.err (!%p344_p0)
}
 0x32c   :  { %s348_s10 = scalar_lea.hbm %s467_s5, 128 }
 0x32d   :  { %p349_p1 = scmp.ne.s32.totalorder %s467_s5, %s348_s10  ;;  %p352_p2 = scmp.lt.u32.totalorder %s348_s10, %s467_s5 }
 0x32f   :  { %p354_p3 = pnand %p352_p2, %p349_p1 }
 0x331   :  { %357 = shalt.err (!%p354_p3)
}
 0x332   :  { %217 = dma.vmem_to_hbm [thread:$0]  %s215_s7, 128, %s467_s5, [#allocation4]  }
 0x333   :  { %362 = dma.done.wait [#allocation4], 128  }
 0x334   :  { %363 = vsyncadd [#allocation4], 4294967168 }
 0x335   :  { %221 = vsyncpa [#allocation3], 1 }
 0x336   :  { %222 = vsyncpa [#allocation6], 1 }
 0x337   :  { %223 = vsyncpa [#allocation4], 1 }

</bundles_post_ra>
